<compile_context>
chip_gen: v7x
topology: tpu7x:2x2x1
jax: 0.10.0
libtpu: 0.0.40
codegen_flags: <defaults>
</compile_context>

<pallas_src>
import numpy as np
import jax
import jax.numpy as jnp
from jax import lax
from jax.experimental import pallas as pl
from jax.experimental.pallas import tpu as pltpu


_LANE = 128      # lane width (last dim must be a multiple of this)
_SUB = 8         # f32 sublane multiple (second-to-last dim)
_EPS = 1e-30     # guards rsqrt on all-zero (padding) rows only


def _ru(x, m):
    return ((x + m - 1) // m) * m


def _pad2(x, rows, cols):
    return jnp.pad(x, ((0, rows - x.shape[0]), (0, cols - x.shape[1])))


# ----------------------------------------------------------------------------
# Image encoder kernel:  l2norm -> Linear(fc) -> l2norm   (EncoderImage.forward)
# ----------------------------------------------------------------------------
def _img_encoder_kernel(feat_ref, w_ref, b_ref, out_ref):
    x = feat_ref[...]                                        # (BB, Dcp) f32
    ss = jnp.sum(x * x, axis=1, keepdims=True)
    xn = x * lax.rsqrt(jnp.maximum(ss, _EPS))                # l2norm (dim=1)
    y = jnp.dot(xn.astype(jnp.bfloat16), w_ref[...],         # bf16 MXU, f32 acc
                preferred_element_type=jnp.float32) + b_ref[...]
    ss2 = jnp.sum(y * y, axis=1, keepdims=True)
    out_ref[...] = y * lax.rsqrt(jnp.maximum(ss2, _EPS))     # l2norm again


def encode_image(img_feats, fc_w, fc_b, *, batch_block=_SUB):
    B, Dc = img_feats.shape
    E = fc_w.shape[1]
    Bp = _ru(max(B, batch_block), batch_block)
    Dcp = _ru(Dc, _LANE)
    Ep = _ru(E, _LANE)

    feats_p = _pad2(img_feats.astype(jnp.float32), Bp, Dcp)
    w_p = _pad2(fc_w, Dcp, Ep).astype(jnp.bfloat16)
    b_p = _pad2(fc_b.reshape(1, E).astype(jnp.float32), 1, Ep)

    nb = Bp // batch_block
    out = pl.pallas_call(
        _img_encoder_kernel,
        out_shape=jax.ShapeDtypeStruct((Bp, Ep), jnp.float32),
        grid_spec=pltpu.PrefetchScalarGridSpec(
            num_scalar_prefetch=0,
            grid=(nb,),
            in_specs=[
                pl.BlockSpec((batch_block, Dcp), lambda i: (i, 0)),
                pl.BlockSpec((Dcp, Ep), lambda i: (0, 0)),
                pl.BlockSpec((1, Ep), lambda i: (0, 0)),
            ],
            out_specs=pl.BlockSpec((batch_block, Ep), lambda i: (i, 0)),
        ),
        compiler_params=pltpu.CompilerParams(
            dimension_semantics=("parallel",),
            vmem_limit_bytes=64 * 1024 * 1024,
        ),
    )(feats_p, w_p, b_p)
    return out[:B, :E]


# ----------------------------------------------------------------------------
# Text encoder kernel: hoisted input projections -> length-masked GRU -> l2norm
# (EncoderText.forward)
# ----------------------------------------------------------------------------
def _txt_encoder_kernel(maxlen_ref, emb_ref, len_ref, wih_ref, whh_ref,
                        gib_ref, bhn_ref, out_ref, gi_scr, h_scr):
    # emb_ref : (T*BB, Wp)  bf16  rows ordered (time, batch-within-block)
    # len_ref : (BB, Hp)    int32 per-row caption length (lane-broadcast)
    # wih_ref : (Wp, 3*Hp)  bf16  gates packed [r | z | n]
    # whh_ref : (Hp, 3*Hp)  bf16
    # gib_ref : (1, 3*Hp)   f32   b_ih (all gates) + b_hh_{r,z} folded
    # bhn_ref : (1, Hp)     f32   b_hh_n (must stay inside r * (...))
    BB, Hp = h_scr.shape
    T = emb_ref.shape[0] // BB

    # Hoisted: input projections for all gates & all time steps — one MXU matmul.
    gi_scr[...] = jnp.dot(emb_ref[...], wih_ref[...],
                          preferred_element_type=jnp.float32) + gib_ref[...]

    # Loop-invariant loads / broadcasts hoisted above the recurrence.
    lens = len_ref[...]                                      # (BB, Hp) int32
    b_hn = jnp.broadcast_to(bhn_ref[...], (BB, Hp))          # (BB, Hp) f32
    h_scr[...] = jnp.zeros_like(h_scr)
    max_t = maxlen_ref[0]

    def step(t, carry):
        @pl.when(t < max_t)                                  # skip pure-padding steps
        def _():
            h = h_scr[...]
            row = pl.multiple_of(t * BB, BB)
            gi = gi_scr[pl.ds(row, BB), :]                   # (BB, 3Hp) f32
            gh = jnp.dot(h.astype(jnp.bfloat16), whh_ref[...],
                         preferred_element_type=jnp.float32)  # fused (BB, 3Hp)
            r = jax.nn.sigmoid(gi[:, :Hp] + gh[:, :Hp])
            z = jax.nn.sigmoid(gi[:, Hp:2 * Hp] + gh[:, Hp:2 * Hp])
            n = jnp.tanh(gi[:, 2 * Hp:] + r * (gh[:, 2 * Hp:] + b_hn))
            h_new = (1.0 - z) * n + z * h
            # pack_padded_sequence equivalent: freeze rows past their length.
            h_scr[...] = jnp.where(t < lens, h_new, h)
        return carry

    lax.fori_loop(0, T, step, 0, unroll=True if T <= 16 else 4)

    h = h_scr[...]
    ss = jnp.sum(h * h, axis=1, keepdims=True)
    out_ref[...] = h * lax.rsqrt(jnp.maximum(ss, _EPS))      # l2norm of final hidden


def encode_text(captions, lengths, embed_tbl, w_ih, w_hh, b_ih, b_hh,
                *, batch_block=_SUB):
    B, T = captions.shape
    W = embed_tbl.shape[1]
    H = w_hh.shape[-1]
    BB = batch_block
    Bp = _ru(max(B, BB), BB)
    Wp = _ru(W, _LANE)
    Hp = _ru(H, _LANE)
    nb = Bp // BB

    # Gather embeddings directly into the kernel layout (batch-block, time,
    # batch-within-block): only the small int32 index matrix is reshuffled.
    cap_p = jnp.pad(captions.astype(jnp.int32), ((0, Bp - B), (0, 0)))
    idx = cap_p.reshape(nb, BB, T).transpose(0, 2, 1).reshape(nb * T * BB)
    emb = embed_tbl[idx]                                     # (nb*T*BB, W) glue gather
    emb = jnp.pad(emb, ((0, 0), (0, Wp - W))).astype(jnp.bfloat16)

    lens = jnp.pad(lengths.astype(jnp.int32), (0, Bp - B))
    lens_b = jnp.broadcast_to(lens[:, None], (Bp, Hp))       # lane-dense mask source
    maxlen = jnp.max(lengths).astype(jnp.int32).reshape(1)   # SMEM scalar prefetch

    # Pack GRU weights: gates [r, z, n] side by side, each padded to Hp lanes;
    # fold b_ih (all gates) and b_hh_{r,z} into the input-side bias.
    def padw(w, rows):
        return _pad2(w, rows, Hp)

    def padb(b):
        return _pad2(b.astype(jnp.float32), 1, Hp)

    wih_p = jnp.concatenate([padw(w_ih[g], Wp) for g in range(3)],
                            axis=1).astype(jnp.bfloat16)     # (Wp, 3Hp)
    whh_p = jnp.concatenate([padw(w_hh[g], Hp) for g in range(3)],
                            axis=1).astype(jnp.bfloat16)     # (Hp, 3Hp)
    gi_bias = jnp.concatenate(
        [padb(b_ih[0] + b_hh[0]), padb(b_ih[1] + b_hh[1]), padb(b_ih[2])],
        axis=1)                                              # (1, 3Hp)
    b_hn = padb(b_hh[2])                                     # (1, Hp)

    out = pl.pallas_call(
        _txt_encoder_kernel,
        out_shape=jax.ShapeDtypeStruct((Bp, Hp), jnp.float32),
        grid_spec=pltpu.PrefetchScalarGridSpec(
            num_scalar_prefetch=1,                           # maxlen -> SMEM
            grid=(nb,),
            in_specs=[
                pl.BlockSpec((T * BB, Wp), lambda i, ml: (i, 0)),
                pl.BlockSpec((BB, Hp), lambda i, ml: (i, 0)),
                pl.BlockSpec((Wp, 3 * Hp), lambda i, ml: (0, 0)),
                pl.BlockSpec((Hp, 3 * Hp), lambda i, ml: (0, 0)),
                pl.BlockSpec((1, 3 * Hp), lambda i, ml: (0, 0)),
                pl.BlockSpec((1, Hp), lambda i, ml: (0, 0)),
            ],
            out_specs=pl.BlockSpec((BB, Hp), lambda i, ml: (i, 0)),
            scratch_shapes=[
                pltpu.VMEM((T * BB, 3 * Hp), jnp.float32),   # hoisted input projections
                pltpu.VMEM((BB, Hp), jnp.float32),           # hidden state
            ],
        ),
        compiler_params=pltpu.CompilerParams(
            dimension_semantics=("parallel",),
            vmem_limit_bytes=64 * 1024 * 1024,
        ),
    )(maxlen, emb, lens_b, wih_p, whh_p, gi_bias, b_hn)
    return out[:B, :H]


def vsepp_forward(img_feats, captions, lengths, params):
    """Mirrors VSEpp.forward(images, captions, lengths) -> (img_emb, cap_emb)."""
    img_emb = None
    cap_emb = None
    if img_feats is not None:
        img_emb = encode_image(img_feats, params["fc_w"], params["fc_b"])
    if captions is not None:
        cap_emb = encode_text(captions, lengths, params["embed"],
                              params["w_ih"], params["w_hh"],
                              params["b_ih"], params["b_hh"])
    return img_emb, cap_emb


# ----------------------------------------------------------------------------
# Deterministic synthetic parameters + example inputs
# ----------------------------------------------------------------------------
if __name__ == "__main__":
    B = 2            # batch
    CNN_DIM = 64     # surrogate ResNet152 pooled-feature dim (fc.in_features)
    EMBED = 32       # opt['embed_size']
    VOCAB = 50       # len(dict.tok2ind)
    WORD = 16        # opt['word_dim']
    T = 8            # caption length (padded)

    key = jax.random.PRNGKey(0)
    ks = jax.random.split(key, 8)

    # images -> pooled CNN features (see TODO at top)
    img_feats = jax.random.normal(ks[0], (B, CNN_DIM), jnp.float32)

    # EncoderImage.fc : Xavier uniform, zero bias (init_weights)
    r = float(np.sqrt(6.0) / np.sqrt(CNN_DIM + EMBED))
    params = {
        "fc_w": jax.random.uniform(ks[1], (CNN_DIM, EMBED), jnp.float32, -r, r),
        "fc_b": jnp.zeros((EMBED,), jnp.float32),
        # EncoderText.embed : uniform(-0.1, 0.1)
        "embed": jax.random.uniform(ks[2], (VOCAB, WORD), jnp.float32, -0.1, 0.1),
    }
    # nn.GRU default init: uniform(-1/sqrt(H), 1/sqrt(H)); gate order [r, z, n]
    s = float(1.0 / np.sqrt(EMBED))
    params["w_ih"] = jax.random.uniform(ks[3], (3, WORD, EMBED), jnp.float32, -s, s)
    params["w_hh"] = jax.random.uniform(ks[4], (3, EMBED, EMBED), jnp.float32, -s, s)
    params["b_ih"] = jax.random.uniform(ks[5], (3, 1, EMBED), jnp.float32, -s, s)
    params["b_hh"] = jax.random.uniform(ks[6], (3, 1, EMBED), jnp.float32, -s, s)

    captions = jax.random.randint(ks[7], (B, T), 0, VOCAB, dtype=jnp.int32)
    lengths = jnp.array([8, 5], dtype=jnp.int32)   # sorted desc, as pack_padded requires

    img_emb, cap_emb = vsepp_forward(img_feats, captions, lengths, params)
    jax.block_until_ready((img_emb, cap_emb))

    assert img_emb.shape == (B, EMBED) and cap_emb.shape == (B, EMBED)
    assert bool(jnp.all(jnp.isfinite(img_emb))) and bool(jnp.all(jnp.isfinite(cap_emb)))
    print("KERNEL_OK")
</pallas_src>

<mosaic_0001>
module attributes {stable_mosaic.version = 11 : i64} {
  func.func @_img_encoder_kernel(%arg0: i32, %arg1: memref<8x128xf32, #tpu.memory_space<vmem>>, %arg2: memref<128x128xbf16, #tpu.memory_space<vmem>>, %arg3: memref<1x128xf32, #tpu.memory_space<vmem>>, %arg4: memref<8x128xf32, #tpu.memory_space<vmem>>) attributes {dimension_semantics = [#tpu.dimension_semantics<parallel>], iteration_bounds = array<i64: 1>, scalar_prefetch = 0 : i64, scratch_operands = 0 : i64, tpu.core_type = #tpu.core_type<tc>, window_params = [{transform_indices = @transform_0, window_bounds = array<i64: 8, 128>}, {pipeline_mode = #tpu.pipeline_mode<synchronous>, transform_indices = @transform_1, window_bounds = array<i64: 128, 128>}, {pipeline_mode = #tpu.pipeline_mode<synchronous>, transform_indices = @transform_2, window_bounds = array<i64: 1, 128>}, {transform_indices = @transform_3, window_bounds = array<i64: 8, 128>}]} {
    %c0 = arith.constant 0 : index
    %c0_0 = arith.constant 0 : index
    %0 = vector.load %arg1[%c0, %c0_0] : memref<8x128xf32, #tpu.memory_space<vmem>>, vector<8x128xf32>
    %1 = arith.mulf %0, %0 : vector<8x128xf32>
    %cst = arith.constant dense<0.000000e+00> : vector<8xf32>
    %2 = vector.multi_reduction <add>, %1, %cst [1] : vector<8x128xf32> to vector<8xf32>
    %3 = vector.shape_cast %2 : vector<8xf32> to vector<8x1xf32>
    %cst_1 = arith.constant 1.000000e-30 : f32
    %4 = vector.broadcast %cst_1 : f32 to vector<8x1xf32>
    %5 = arith.maximumf %3, %4 : vector<8x1xf32>
    %6 = math.rsqrt %5 : vector<8x1xf32>
    %7 = vector.broadcast %6 : vector<8x1xf32> to vector<8x128xf32>
    %8 = arith.mulf %0, %7 : vector<8x128xf32>
    %9 = arith.truncf %8 : vector<8x128xf32> to vector<8x128xbf16>
    %c0_2 = arith.constant 0 : index
    %c0_3 = arith.constant 0 : index
    %10 = vector.load %arg2[%c0_2, %c0_3] : memref<128x128xbf16, #tpu.memory_space<vmem>>, vector<128x128xbf16>
    %cst_4 = arith.constant dense<0.000000e+00> : vector<8x128xf32>
    %11 = tpu.matmul %9, %10, %cst_4 {dimension_numbers = #tpu.dot_dimension_numbers<[1], [0], [0], [1], [0, 0, 1, 1], [], []>} : vector<8x128xbf16>, vector<128x128xbf16>, vector<8x128xf32> -> vector<8x128xf32>
    %c0_5 = arith.constant 0 : index
    %c0_6 = arith.constant 0 : index
    %12 = vector.load %arg3[%c0_5, %c0_6] : memref<1x128xf32, #tpu.memory_space<vmem>>, vector<1x128xf32>
    %13 = vector.broadcast %12 : vector<1x128xf32> to vector<8x128xf32>
    %14 = arith.addf %11, %13 : vector<8x128xf32>
    %15 = arith.mulf %14, %14 : vector<8x128xf32>
    %cst_7 = arith.constant dense<0.000000e+00> : vector<8xf32>
    %16 = vector.multi_reduction <add>, %15, %cst_7 [1] : vector<8x128xf32> to vector<8xf32>
    %17 = vector.shape_cast %16 : vector<8xf32> to vector<8x1xf32>
    %cst_8 = arith.constant 1.000000e-30 : f32
    %18 = vector.broadcast %cst_8 : f32 to vector<8x1xf32>
    %19 = arith.maximumf %17, %18 : vector<8x1xf32>
    %20 = math.rsqrt %19 : vector<8x1xf32>
    %21 = vector.broadcast %20 : vector<8x1xf32> to vector<8x128xf32>
    %22 = arith.mulf %14, %21 : vector<8x128xf32>
    %c0_9 = arith.constant 0 : index
    %c0_10 = arith.constant 0 : index
    %23 = vector.load %arg4[%c0_9, %c0_10] : memref<8x128xf32, #tpu.memory_space<vmem>>, vector<8x128xf32>
    tpu.vector_store %arg4[%c0_9, %c0_10], %22 {strides = array<i32>} : memref<8x128xf32, #tpu.memory_space<vmem>>, vector<8x128xf32>,
    return
  }
  func.func @transform_0(%arg0: i32) -> (i32, i32) {
    %c0_i32 = arith.constant 0 : i32
    %c0_i32_0 = arith.constant 0 : i32
    return %arg0, %c0_i32 : i32, i32
  }
  func.func @transform_1(%arg0: i32) -> (i32, i32) {
    %c0_i32 = arith.constant 0 : i32
    %c0_i32_0 = arith.constant 0 : i32
    %c0_i32_1 = arith.constant 0 : i32
    return %c0_i32, %c0_i32_0 : i32, i32
  }
  func.func @transform_2(%arg0: i32) -> (i32, i32) {
    %c0_i32 = arith.constant 0 : i32
    %c0_i32_0 = arith.constant 0 : i32
    %c0_i32_1 = arith.constant 0 : i32
    return %c0_i32, %c0_i32_0 : i32, i32
  }
  func.func @transform_3(%arg0: i32) -> (i32, i32) {
    %c0_i32 = arith.constant 0 : i32
    %c0_i32_0 = arith.constant 0 : i32
    return %arg0, %c0_i32 : i32, i32
  }
}

</mosaic_0001>

<bundles_post_ra>
// kernel: tpu_custom_call.1
= control target key start
LH: loop header
LB: loop body
LE: loop exit
PB: predicated region body
PF: predicated region fallthrough
CT: control target
= control target key end

     0   :  { %8 = vsyncpa [#allocation3], 0  ;;  %s423_s0 = inlined_call_operand.hbm [shape: f32[8,128], index: 0, kind: input, shape index: {}]   ;;  %s424_s1 = inlined_call_operand.hbm [shape: bf16[128,128], index: 1, kind: input, shape index: {}]   ;;  %s425_s2 = inlined_call_operand.hbm [shape: f32[1,128], index: 2, kind: input, shape index: {}]   ;;  %s426_s3 = inlined_call_operand.hbm [shape: f32[8,128], index: 3, kind: output, shape index: {}]  }
   0x1   :  { %9 = vsyncpa [#allocation6], 0 }
   0x2   :  { %10 = vsyncpa [#allocation4], 0  ;;  %s347_s12 = smov [#allocation5]   ;;  %s253_s16 = scalar_lea.hbm %s424_s1, 1024 }
   0x3   :  { %s26_s13 = sshll.u32 %s347_s12, 4  ;;  %p254_p0 = scmp.ne.s32.totalorder %s424_s1, %s253_s16  ;;  %s27_s13 = int_to_ptr.vmem [resolvable:$true] %s26_s13 }
   0x4   :  { %p257_p1 = scmp.lt.u32.totalorder %s253_s16, %s424_s1 }
   0x6   :  { %p259_p2 = pnand %p257_p1, %p254_p0 }
   0x8   :  { %262 = shalt.err (!%p259_p2)
}
   0x9   :  { %s263_s21 = scalar_lea.vmem %s27_s13, 1024  ;;  %p268_p4 = scmp.lt.s32.totalorder %s27_s13, %s27_s13 }
   0xa   :  { %p264_p3 = scmp.ne.s32.totalorder %s27_s13, %s263_s21  ;;  %p269_p5 = scmp.lt.s32.totalorder %s263_s21, %s263_s21 }
   0xc   :  { %p270_p6 = por %p269_p5, %p268_p4 }
   0xe   :  { %p271_p7 = pnand %p270_p6, %p264_p3 }
  0x10   :  { %274 = shalt.err (!%p271_p7)
}
  0x11   :  { %s348_s22 = smov 64   ;;  %s349_s23 = smov 4  }
  0x12   :  { %32 = dma.hbm_to_vmem [thread:$0]  %s424_s1, 1024, %s27_s13, [#allocation6], %s348_s22, %s348_s22, %s349_s23  }
  0x13   :  { %s350_s26 = smov [#allocation2]   ;;  %s351_s28 = smov [#allocation7]  }
  0x14   :  { %s17_s27 = sshll.u32 %s350_s26, 4  ;;  %s39_s29 = sshll.u32 %s351_s28, 4  ;;  %s18_s27 = int_to_ptr.vmem [resolvable:$true] %s17_s27  ;;  %s40_s29 = int_to_ptr.vmem [resolvable:$true] %s39_s29 }
  0x15   :  { %s275_s5 = scalar_lea.hbm %s423_s0, 128 }
  0x16   :  { %p276_p8 = scmp.ne.s32.totalorder %s423_s0, %s275_s5  ;;  %p279_p9 = scmp.lt.u32.totalorder %s275_s5, %s423_s0 }
  0x18   :  { %p281_p10 = pnand %p279_p9, %p276_p8 }
  0x1a   :  { %284 = shalt.err (!%p281_p10)
}
  0x1b   :  { %s285_s1 = scalar_lea.vmem %s18_s27, 128  ;;  %p290_p12 = scmp.lt.s32.totalorder %s18_s27, %s18_s27 }
  0x1c   :  { %p286_p11 = scmp.ne.s32.totalorder %s18_s27, %s285_s1  ;;  %p291_p13 = scmp.lt.s32.totalorder %s285_s1, %s285_s1 }
  0x1e   :  { %p292_p0 = por %p291_p13, %p290_p12 }
  0x20   :  { %p293_p1 = pnand %p292_p0, %p286_p11 }
  0x22   :  { %296 = shalt.err (!%p293_p1)
}
  0x23   :  { %20 = dma.hbm_to_vmem [thread:$0]  %s423_s0, 128, %s18_s27, [#allocation3]  }
  0x24   :  { %s297_s14 = scalar_lea.hbm %s425_s2, 16 }
  0x25   :  { %p298_p2 = scmp.ne.s32.totalorder %s425_s2, %s297_s14  ;;  %p301_p3 = scmp.lt.u32.totalorder %s297_s14, %s425_s2 }
  0x27   :  { %p303_p4 = pnand %p301_p3, %p298_p2 }
  0x29   :  { %306 = shalt.err (!%p303_p4)
}
  0x2a   :  { %s307_s19 = scalar_lea.vmem %s40_s29, 16  ;;  %s311_s20 = scalar_lea.vmem %s40_s29, 32 }
  0x2b   :  { %p308_p5 = scmp.ne.s32.totalorder %s40_s29, %s307_s19  ;;  %p312_p6 = scmp.lt.s32.totalorder %s40_s29, %s40_s29 }
  0x2c   :  { %p313_p7 = scmp.lt.s32.totalorder %s311_s20, %s307_s19 }
  0x2e   :  { %p314_p8 = por %p313_p7, %p312_p6 }
  0x30   :  { %p315_p9 = pnand %p314_p8, %p308_p5 }
  0x32   :  { %318 = shalt.err (!%p315_p9)
}
  0x33   :  { %42 = dma.hbm_to_vmem [thread:$0]  %s425_s2, 16, %s40_s29, [#allocation6]  }
  0x34   :  { %341 = dma.done.wait [#allocation3], 128  }
  0x35   :  { %342 = vsyncadd [#allocation3], 4294967168 }
  0x36   :  { %343 = dma.done.wait [#allocation6], 1040  }
  0x37   :  { %344 = vsyncadd [#allocation6], 4294966256  ;;  %v352_v0 = vmov 0.0   ;;  %v53_v1 = vld [vmem:[#allocation2] sm:$0xff]  ;;  %v241_v3 = vld [vmem:[#allocation5] sm:$0xff]   ;;  %vm353_vm0 = vmmov 0  }
  0x38   :  { %213 = vmatprep.subr.bf16.mxu0 %v352_v0  ;;  %v54_v2 = vmul.f32 %v53_v1, %v53_v1  ;;  %v242_v4 = vld [vmem:[#allocation5 + $0x8] sm:$0xff]   ;;  %v243_v5 = vld [vmem:[#allocation5 + $0x10] sm:$0xff]   ;;  %v244_v6 = vld [vmem:[#allocation5 + $0x18] sm:$0xff]   ;;  %229 = vmatprep.mubr.msk.bf16.mxu0 %vm353_vm0, %v352_v0  ;;  %s354_s2 = smov [#allocation8]  }
  0x39   :  { %214 = vmatpush3.bf16.msra.mxu0 %v241_v3  ;;  %v245_v7 = vld [vmem:[#allocation5 + $0x20] sm:$0xff]   ;;  %v246_v8 = vld [vmem:[#allocation5 + $0x28] sm:$0xff]   ;;  %v247_v9 = vld [vmem:[#allocation5 + $0x30] sm:$0xff]   ;;  %s185_s22 = sshll.u32 %s354_s2, 4  ;;  %s186_s22 = int_to_ptr.vmem [resolvable:$true] %s185_s22 }
  0x3a   :  { %55 = vadd.xlane.f32.xlu0 %v54_v2  ;;  %215 = vmatprep.subr.bf16.mxu0 %v352_v0  ;;  %v248_v10 = vld [vmem:[#allocation5 + $0x38] sm:$0xff]   ;;  %v195_v16 = vld [vmem:[#allocation7] ss:$0 sm:$0xff]  ;;  %s319_s23 = scalar_lea.vmem %s186_s22, 128  ;;  %p324_p11 = scmp.lt.s32.totalorder %s186_s22, %s186_s22 }
  0x3b   :  { %p320_p10 = scmp.ne.s32.totalorder %s186_s22, %s319_s23  ;;  %p325_p12 = scmp.lt.s32.totalorder %s319_s23, %s319_s23 }
  0x3d   :  { %216 = vmatpush3.bf16.msra.mxu0 %v242_v4  ;;  %p326_p13 = por %p325_p12, %p324_p11 }
  0x3e   :  { %217 = vmatprep.subr.bf16.mxu0 %v352_v0 }
  0x3f   :  { %p327_p0 = pnand %p326_p13, %p320_p10 }
  0x41   :  { %218 = vmatpush3.bf16.msra.mxu0 %v243_v5 }
  0x42   :  { %219 = vmatprep.subr.bf16.mxu0 %v352_v0 }
  0x45   :  { %220 = vmatpush3.bf16.msra.mxu0 %v244_v6 }
  0x46   :  { %221 = vmatprep.subr.bf16.mxu0 %v352_v0 }
  0x49   :  { %222 = vmatpush3.bf16.msra.mxu0 %v245_v7 }
  0x4a   :  { %223 = vmatprep.subr.bf16.mxu0 %v352_v0 }
  0x4d   :  { %224 = vmatpush3.bf16.msra.mxu0 %v246_v8 }
  0x4e   :  { %225 = vmatprep.subr.bf16.mxu0 %v352_v0 }
  0x51   :  { %226 = vmatpush3.bf16.msra.mxu0 %v247_v9 }
  0x52   :  { %227 = vmatprep.subr.bf16.mxu0 %v352_v0 }
  0x55   :  { %228 = vmatpush3.bf16.msra.mxu0 %v248_v10 }
  0xc7   :  { %v56_v11 = vpop.xlane.xlu0 %55 }
  0xc8   :  { %v57_v12 = vmax.f32 %v56_v11, 1e-30 }
  0xca   :  { %249 = vrsqrt.f32 %v57_v12 }
  0xd4   :  { %v250_v13 = vpop.eup %249 }
  0xd5   :  { %v59_v14 = vmul.f32 %v250_v13, %v53_v1 }
  0xd7   :  { %v60_v15 = vpack.c.bf16 %v59_v14, %v59_v14 }
  0xd9   :  { %230 = vmatmul.mubr.bf16.vlgmr.msra.gmra.mrb[0].mxu0 %v60_v15 }
 0x1ac   :  { %v166_v17 = vpop.f32.mrb[0].mxu0 }
 0x1ad   :  { %v167_v18 = vadd.f32 %v195_v16, %v166_v17  ;;  %v231_v19 = vpop.f32.mrb[1].mxu0 }
 0x1ae   :  { %v169_v20 = vpop.f32.mrb[2].mxu0 }
 0x1af   :  { %v232_v21 = vpop.f32.mrb[3].mxu0  ;;  %v172_v22 = vmul.f32 %v167_v18, %v167_v18 }
 0x1b1   :  { %173 = vadd.xlane.f32.xlu0 %v172_v22 }
 0x23e   :  { %v174_v23 = vpop.xlane.xlu0 %173 }
 0x23f   :  { %v175_v24 = vmax.f32 %v174_v23, 1e-30 }
 0x241   :  { %251 = vrsqrt.f32 %v175_v24 }
 0x24b   :  { %v252_v25 = vpop.eup %251 }
 0x24c   :  { %v177_v26 = vmul.f32 %v252_v25, %v167_v18 }
 0x24e   :  { %178 = vst [vmem:[#allocation8] sm:$0xff] %v177_v26 }
 0x24f   :  { %330 = shalt.err (!%p327_p0)
}
 0x250   :  { %s331_s26 = scalar_lea.hbm %s426_s3, 128 }
 0x251   :  { %p332_p1 = scmp.ne.s32.totalorder %s426_s3, %s331_s26  ;;  %p335_p2 = scmp.lt.u32.totalorder %s331_s26, %s426_s3 }
 0x253   :  { %p337_p3 = pnand %p335_p2, %p332_p1 }
 0x255   :  { %340 = shalt.err (!%p337_p3)
}
 0x256   :  { %188 = dma.vmem_to_hbm [thread:$0]  %s186_s22, 128, %s426_s3, [#allocation4]  }
 0x257   :  { %345 = dma.done.wait [#allocation4], 128  }
 0x258   :  { %346 = vsyncadd [#allocation4], 4294967168 }
 0x259   :  { %192 = vsyncpa [#allocation3], 1 }
 0x25a   :  { %193 = vsyncpa [#allocation6], 1 }
 0x25b   :  { %194 = vsyncpa [#allocation4], 1 }

</bundles_post_ra>
